<compile_context>
chip_gen: v7x
topology: tpu7x:2x2x1
jax: 0.10.0
libtpu: 0.0.40
codegen_flags: <defaults>
</compile_context>

<pallas_src>
import functools

import jax
import jax.numpy as jnp
from jax import lax
from jax.experimental import pallas as pl
from jax.experimental.pallas import tpu as pltpu

LANE = 128
SUBLANE = 8
CHUNK_ROWS = 256                       # rows per in-kernel reduce chunk (128 KiB f32)
TARGET_TILE_BYTES = 4 * 1024 * 1024    # per-input, per-buffer DMA tile target
VMEM_LIMIT_BYTES = 40 * 1024 * 1024    # < 64 MiB physical on v7x; > v5e 16 MiB default


def _round_up(x, m):
    return ((x + m - 1) // m) * m


def _elem_loss(x, y, c):
    """Per-element BCE-with-logits (f32 in, f32 out)."""
    sp = jnp.maximum(-x, 0.0) + jnp.log1p(jnp.exp(-jnp.abs(x)))
    return (1.0 - y) * x + (1.0 + c * y) * sp


def _bce_partial_kernel(x_ref, y_ref, part_ref, *, c, block_rows, chunk_rows,
                        last_valid_rows, num_blocks):
    """Writes the (8, 128) f32 partial sum of the loss over this grid block."""
    n_chunks = block_rows // chunk_rows
    zero = jnp.zeros((SUBLANE, LANE), jnp.float32)

    def chunk_sum(r0, valid_rows):
        # Native-dtype loads; upcast to f32 in-register.
        x = x_ref[pl.ds(r0, chunk_rows), :].astype(jnp.float32)
        y = y_ref[pl.ds(r0, chunk_rows), :].astype(jnp.float32)
        per = _elem_loss(x, y, c)
        if valid_rows is not None:
            # Block-local row index; no flat 32-bit index (no overflow risk).
            row = r0 + lax.broadcasted_iota(jnp.int32, (chunk_rows, LANE), 0)
            per = jnp.where(row < valid_rows, per, 0.0)
        # (chunk_rows, 128) -> (8, 128) via cheap cross-tile VPU adds.
        return jnp.sum(per.reshape(chunk_rows // SUBLANE, SUBLANE, LANE), axis=0)

    def full_loop():
        def body(i, acc):
            r0 = pl.multiple_of(i * chunk_rows, chunk_rows)
            return acc + chunk_sum(r0, None)
        return lax.fori_loop(0, n_chunks, body, zero)

    def masked_loop():
        n_valid_chunks = pl.cdiv(last_valid_rows, chunk_rows)  # static
        def body(i, acc):
            r0 = pl.multiple_of(i * chunk_rows, chunk_rows)
            return acc + chunk_sum(r0, last_valid_rows)
        return lax.fori_loop(0, n_valid_chunks, body, zero)

    if last_valid_rows == block_rows:
        # Rows divide the block exactly: no mask anywhere.
        part_ref[...] = full_loop()
    elif num_blocks == 1:
        # Single (ragged) block: masked path only.
        part_ref[...] = masked_loop()
    else:
        # Mask cost only on the last (ragged) block.
        is_last = pl.program_id(0) == num_blocks - 1

        @pl.when(jnp.logical_not(is_last))
        def _():
            part_ref[...] = full_loop()

        @pl.when(is_last)
        def _():
            part_ref[...] = masked_loop()


def simple_loss(ypred, ytgt, pos_weight):
    """BCEWithLogitsLoss(pos_weight)(ypred, ytgt), mean reduction, via Pallas."""
    assert ypred.shape == ytgt.shape
    total_n = 1
    for d in ypred.shape:
        total_n *= d
    assert total_n > 0

    # pos_weight is a static module hyperparameter (folded into the kernel).
    # TODO(synk): if pos_weight ever needs to be traced, pass it as an SMEM scalar.
    c = float(pos_weight) - 1.0

    # Native dtype straight through -- no wrapper-side f32 cast (extra HBM pass).
    x_flat = ypred.reshape(-1)
    y_flat = ytgt.reshape(-1)

    rows = total_n // LANE
    main_n = rows * LANE

    # Sub-128 lane remainder handled in plain XLA (< 128 elements); avoids any
    # full-array pad for the common 128-divisible case.
    tail_sum = jnp.float32(0.0)
    if main_n < total_n:
        tail_sum = jnp.sum(_elem_loss(x_flat[main_n:].astype(jnp.float32),
                                      y_flat[main_n:].astype(jnp.float32), c))

    main_sum = jnp.float32(0.0)
    if rows > 0:
        itemsize = max(jnp.dtype(ypred.dtype).itemsize,
                       jnp.dtype(ytgt.dtype).itemsize)
        target_rows = max(CHUNK_ROWS, TARGET_TILE_BYTES // (LANE * itemsize))

        if rows <= CHUNK_ROWS:
            # Tiny input: one block, one chunk.  16-row alignment is bf16-safe.
            block_rows = _round_up(rows, 16)
            chunk_rows = block_rows
        else:
            # Keep >= 2 blocks so the "parallel" axis shards across both v7x TCs.
            block_rows = min(target_rows, _round_up(pl.cdiv(rows, 2), CHUNK_ROWS))
            chunk_rows = CHUNK_ROWS

        num_blocks = pl.cdiv(rows, block_rows)
        last_valid_rows = rows - (num_blocks - 1) * block_rows

        # main_n == total_n (common case) => pure reshape, no data movement.
        # TODO(synk): for ragged-lane inputs the [:main_n] slice may copy the main
        # slab; CompilerParams(allow_input_fusion=...) could fuse it into the DMA.
        x2d = x_flat[:main_n].reshape(rows, LANE)
        y2d = y_flat[:main_n].reshape(rows, LANE)

        if rows <= CHUNK_ROWS and block_rows != rows:
            # Pad the tiny slab (<= 128 KiB) so the single block matches the array;
            # padded rows are excluded by the in-kernel row mask.
            pad = block_rows - rows
            x2d = jnp.pad(x2d, ((0, pad), (0, 0)))
            y2d = jnp.pad(y2d, ((0, pad), (0, 0)))

        kernel = functools.partial(
            _bce_partial_kernel,
            c=c,
            block_rows=block_rows,
            chunk_rows=chunk_rows,
            last_valid_rows=last_valid_rows,
            num_blocks=num_blocks,
        )

        partials = pl.pallas_call(
            kernel,
            out_shape=jax.ShapeDtypeStruct((num_blocks * SUBLANE, LANE), jnp.float32),
            grid=(num_blocks,),
            in_specs=[
                pl.BlockSpec((block_rows, LANE), lambda i: (i, 0)),  # logits tile
                pl.BlockSpec((block_rows, LANE), lambda i: (i, 0)),  # targets tile
            ],
            out_specs=pl.BlockSpec((SUBLANE, LANE), lambda i: (i, 0)),
            compiler_params=pltpu.CompilerParams(
                dimension_semantics=("parallel",),
                vmem_limit_bytes=VMEM_LIMIT_BYTES),
        )(x2d, y2d)
        main_sum = jnp.sum(partials)

    return (main_sum + tail_sum) / jnp.float32(total_n)


def _reference_loss(ypred, ytgt, pos_weight):
    x = ypred.astype(jnp.float32)
    y = ytgt.astype(jnp.float32)
    return jnp.mean(_elem_loss(x, y, float(pos_weight) - 1.0))


if __name__ == "__main__":
    key = jax.random.PRNGKey(0)
    k1, k2, k3, k4 = jax.random.split(key, 4)

    pos_weight = 2.13  # static hyperparameter from the module __init__

    # Segmentation-style BCE loss inputs: (B, C, H, W)
    B, C, H, W = 2, 4, 16, 16
    ypred = jax.random.normal(k1, (B, C, H, W), dtype=jnp.float32)
    ytgt = (jax.random.uniform(k2, (B, C, H, W)) > 0.5).astype(jnp.float32)

    loss = jax.block_until_ready(simple_loss(ypred, ytgt, pos_weight))
    ref = _reference_loss(ypred, ytgt, pos_weight)
    assert jnp.allclose(loss, ref, rtol=1e-5, atol=1e-6), (loss, ref)

    # Ragged path: total not divisible by 128, rows not a multiple of 16.
    B2, C2, H2, W2 = 2, 3, 15, 17
    ypred2 = jax.random.normal(k3, (B2, C2, H2, W2), dtype=jnp.float32)
    ytgt2 = (jax.random.uniform(k4, (B2, C2, H2, W2)) > 0.5).astype(jnp.float32)
    loss2 = jax.block_until_ready(simple_loss(ypred2, ytgt2, pos_weight))
    ref2 = _reference_loss(ypred2, ytgt2, pos_weight)
    assert jnp.allclose(loss2, ref2, rtol=1e-5, atol=1e-6), (loss2, ref2)

    # bf16 logits stream in natively (no wrapper cast); f32 accumulation in-kernel.
    ypred3 = ypred.astype(jnp.bfloat16)
    loss3 = jax.block_until_ready(simple_loss(ypred3, ytgt, pos_weight))
    ref3 = _reference_loss(ypred3.astype(jnp.float32), ytgt, pos_weight)
    assert jnp.allclose(loss3, ref3, rtol=1e-3, atol=1e-3), (loss3, ref3)

    print("KERNEL_OK")
</pallas_src>

<mosaic_0001>
module attributes {stable_mosaic.version = 11 : i64} {
  func.func @_bce_partial_kernel(%arg0: i32, %arg1: memref<16x128xf32, #tpu.memory_space<vmem>>, %arg2: memref<16x128xf32, #tpu.memory_space<vmem>>, %arg3: memref<8x128xf32, #tpu.memory_space<vmem>>) attributes {dimension_semantics = [#tpu.dimension_semantics<parallel>], iteration_bounds = array<i64: 1>, scalar_prefetch = 0 : i64, scratch_operands = 0 : i64, tpu.core_type = #tpu.core_type<tc>, window_params = [{transform_indices = @transform_0, window_bounds = array<i64: 16, 128>}, {transform_indices = @transform_1, window_bounds = array<i64: 16, 128>}, {transform_indices = @transform_2, window_bounds = array<i64: 8, 128>}]} {
    %cst = arith.constant 0.000000e+00 : f32
    %0 = vector.broadcast %cst : f32 to vector<8x128xf32>
    %c0_i32 = arith.constant 0 : i32
    %c16_i32 = arith.constant 16 : i32
    %1 = arith.muli %c0_i32, %c16_i32 : i32
    %2 = tpu.assume_multiple %1, 16 : i32
    %3 = arith.index_cast %2 : i32 to index
    %c0 = arith.constant 0 : index
    %4 = vector.load %arg1[%3, %c0] : memref<16x128xf32, #tpu.memory_space<vmem>>, vector<16x128xf32>
    %5 = arith.index_cast %2 : i32 to index
    %c0_0 = arith.constant 0 : index
    %6 = vector.load %arg2[%5, %c0_0] : memref<16x128xf32, #tpu.memory_space<vmem>>, vector<16x128xf32>
    %cst_1 = arith.constant 0.000000e+00 : f32
    %7 = vector.broadcast %cst_1 : f32 to vector<16x128xf32>
    %8 = arith.subf %7, %4 : vector<16x128xf32>
    %cst_2 = arith.constant 0.000000e+00 : f32
    %9 = vector.broadcast %cst_2 : f32 to vector<16x128xf32>
    %10 = arith.maximumf %8, %9 : vector<16x128xf32>
    %11 = math.absf %4 : vector<16x128xf32>
    %cst_3 = arith.constant 0.000000e+00 : f32
    %12 = vector.broadcast %cst_3 : f32 to vector<16x128xf32>
    %13 = arith.subf %12, %11 : vector<16x128xf32>
    %14 = math.exp %13 : vector<16x128xf32>
    %15 = math.log1p %14 : vector<16x128xf32>
    %16 = arith.addf %10, %15 : vector<16x128xf32>
    %cst_4 = arith.constant 1.000000e+00 : f32
    %17 = vector.broadcast %cst_4 : f32 to vector<16x128xf32>
    %18 = arith.subf %17, %6 : vector<16x128xf32>
    %19 = arith.mulf %18, %4 : vector<16x128xf32>
    %cst_5 = arith.constant 1.130000e+00 : f32
    %20 = vector.broadcast %cst_5 : f32 to vector<16x128xf32>
    %21 = arith.mulf %20, %6 : vector<16x128xf32>
    %cst_6 = arith.constant 1.000000e+00 : f32
    %22 = vector.broadcast %cst_6 : f32 to vector<16x128xf32>
    %23 = arith.addf %22, %21 : vector<16x128xf32>
    %24 = arith.mulf %23, %16 : vector<16x128xf32>
    %25 = arith.addf %19, %24 : vector<16x128xf32>
    %26 = vector.shape_cast %25 : vector<16x128xf32> to vector<2x8x128xf32>
    %cst_7 = arith.constant dense<0.000000e+00> : vector<8x128xf32>
    %27 = vector.multi_reduction <add>, %26, %cst_7 [0] : vector<2x8x128xf32> to vector<8x128xf32>
    %28 = arith.addf %0, %27 : vector<8x128xf32>
    %c1_i32 = arith.constant 1 : i32
    %c0_8 = arith.constant 0 : index
    %c0_9 = arith.constant 0 : index
    %29 = vector.load %arg3[%c0_8, %c0_9] : memref<8x128xf32, #tpu.memory_space<vmem>>, vector<8x128xf32>
    tpu.vector_store %arg3[%c0_8, %c0_9], %28 {strides = array<i32>} : memref<8x128xf32, #tpu.memory_space<vmem>>, vector<8x128xf32>,
    return
  }
  func.func @transform_0(%arg0: i32) -> (i32, i32) {
    %c0_i32 = arith.constant 0 : i32
    %c0_i32_0 = arith.constant 0 : i32
    return %arg0, %c0_i32 : i32, i32
  }
  func.func @transform_1(%arg0: i32) -> (i32, i32) {
    %c0_i32 = arith.constant 0 : i32
    %c0_i32_0 = arith.constant 0 : i32
    return %arg0, %c0_i32 : i32, i32
  }
  func.func @transform_2(%arg0: i32) -> (i32, i32) {
    %c0_i32 = arith.constant 0 : i32
    %c0_i32_0 = arith.constant 0 : i32
    return %arg0, %c0_i32 : i32, i32
  }
}

</mosaic_0001>

<bundles_post_ra>
// kernel: tpu_custom_call.1
= control target key start
LH: loop header
LB: loop body
LE: loop exit
PB: predicated region body
PF: predicated region fallthrough
CT: control target
= control target key end

     0   :  { %7 = vsyncpa [#allocation3], 0  ;;  %s248_s0 = inlined_call_operand.hbm [shape: f32[16,128], index: 0, kind: input, shape index: {}]   ;;  %s249_s1 = inlined_call_operand.hbm [shape: f32[16,128], index: 1, kind: input, shape index: {}]   ;;  %s250_s2 = inlined_call_operand.hbm [shape: f32[8,128], index: 2, kind: output, shape index: {}]  }
   0x1   :  { %8 = vsyncpa [#allocation6], 0 }
   0x2   :  { %9 = vsyncpa [#allocation4], 0  ;;  %s192_s9 = smov [#allocation2]   ;;  %s120_s13 = scalar_lea.hbm %s248_s0, 256 }
   0x3   :  { %s15_s10 = sshll.u32 %s192_s9, 4  ;;  %p121_p0 = scmp.ne.s32.totalorder %s248_s0, %s120_s13  ;;  %s16_s10 = int_to_ptr.vmem [resolvable:$true] %s15_s10 }
   0x4   :  { %p124_p1 = scmp.lt.u32.totalorder %s120_s13, %s248_s0 }
   0x6   :  { %p126_p2 = pnand %p124_p1, %p121_p0 }
   0x8   :  { %129 = shalt.err (!%p126_p2)
}
   0x9   :  { %s130_s18 = scalar_lea.vmem %s16_s10, 256  ;;  %p135_p4 = scmp.lt.s32.totalorder %s16_s10, %s16_s10 }
   0xa   :  { %p131_p3 = scmp.ne.s32.totalorder %s16_s10, %s130_s18  ;;  %p136_p5 = scmp.lt.s32.totalorder %s130_s18, %s130_s18 }
   0xc   :  { %p137_p6 = por %p136_p5, %p135_p4 }
   0xe   :  { %p138_p7 = pnand %p137_p6, %p131_p3 }
  0x10   :  { %141 = shalt.err (!%p138_p7)
}
  0x11   :  { %s193_s19 = smov 128   ;;  %s194_s20 = smov 8  }
  0x12   :  { %21 = dma.hbm_to_vmem [thread:$0]  %s248_s0, 256, %s16_s10, [#allocation3], %s193_s19, %s193_s19, %s194_s20  }
  0x13   :  { %s195_s23 = smov [#allocation5]   ;;  %s142_s27 = scalar_lea.hbm %s249_s1, 256 }
  0x14   :  { %s27_s24 = sshll.u32 %s195_s23, 4  ;;  %p143_p8 = scmp.ne.s32.totalorder %s249_s1, %s142_s27  ;;  %s28_s24 = int_to_ptr.vmem [resolvable:$true] %s27_s24 }
  0x15   :  { %p146_p9 = scmp.lt.u32.totalorder %s142_s27, %s249_s1 }
  0x17   :  { %p148_p10 = pnand %p146_p9, %p143_p8 }
  0x19   :  { %151 = shalt.err (!%p148_p10)
}
  0x1a   :  { %s152_s4 = scalar_lea.vmem %s28_s24, 256  ;;  %p157_p12 = scmp.lt.s32.totalorder %s28_s24, %s28_s24 }
  0x1b   :  { %p153_p11 = scmp.ne.s32.totalorder %s28_s24, %s152_s4  ;;  %p158_p13 = scmp.lt.s32.totalorder %s152_s4, %s152_s4 }
  0x1d   :  { %p159_p0 = por %p158_p13, %p157_p12 }
  0x1f   :  { %p160_p1 = pnand %p159_p0, %p153_p11 }
  0x21   :  { %163 = shalt.err (!%p160_p1)
}
  0x22   :  { %33 = dma.hbm_to_vmem [thread:$0]  %s249_s1, 256, %s28_s24, [#allocation6], %s193_s19, %s193_s19, %s194_s20  }
  0x23   :  { %186 = dma.done.wait [#allocation3], 256  }
  0x24   :  { %187 = vsyncadd [#allocation3], 4294967040 }
  0x25   :  { %188 = dma.done.wait [#allocation6], 256  }
  0x26   :  { %189 = vsyncadd [#allocation6], 4294967040  ;;  %v40_v0 = vld [vmem:[#allocation2] sm:$0xff]  ;;  %v41_v1 = vld [vmem:[#allocation2 + $0x8] sm:$0xff]  ;;  %s196_s1 = smov [#allocation7]  }
  0x27   :  { %v48_v2 = vand.u32 2147483647, %v40_v0  ;;  %v49_v3 = vand.u32 2147483647, %v41_v1  ;;  %v42_v14 = vld [vmem:[#allocation5] sm:$0xff]  ;;  %v43_v16 = vld [vmem:[#allocation5 + $0x8] sm:$0xff] }
  0x28   :  { %v44_v17 = vsub.f32 0.0, %v40_v0  ;;  %v45_v20 = vsub.f32 0.0, %v41_v1  ;;  %v80_v22 = vmul.f32 1.13, %v42_v14  ;;  %v81_v24 = vmul.f32 1.13, %v43_v16 }
  0x29   :  { %v50_v4 = vsub.f32 0.0, %v48_v2  ;;  %v51_v5 = vsub.f32 0.0, %v49_v3  ;;  %v76_v28 = vsub.f32 1.0, %v42_v14  ;;  %v77_v32 = vsub.f32 1.0, %v43_v16  ;;  %s97_s6 = sshll.u32 %s196_s1, 4  ;;  %s98_s6 = int_to_ptr.vmem [resolvable:$true] %s97_s6 }
  0x2a   :  { %v46_v26 = vmax.f32 %v44_v17, 0.0  ;;  %v47_v30 = vmax.f32 %v45_v20, 0.0  ;;  %v82_v34 = vadd.f32 1.0, %v80_v22  ;;  %v83_v36 = vadd.f32 1.0, %v81_v24  ;;  %s164_s7 = scalar_lea.vmem %s98_s6, 128  ;;  %p169_p3 = scmp.lt.s32.totalorder %s98_s6, %s98_s6 }
  0x2b   :  { %v52_v6 = vmul.f32 1.442695, %v50_v4  ;;  %v54_v7 = vmul.f32 1.442695, %v51_v5  ;;  %v78_v39 = vmul.f32 %v76_v28, %v40_v0  ;;  %v79_v41 = vmul.f32 %v77_v32, %v41_v1  ;;  %p165_p2 = scmp.ne.s32.totalorder %s98_s6, %s164_s7  ;;  %p170_p4 = scmp.lt.s32.totalorder %s164_s7, %s164_s7 }
  0x2d   :  { %112 = vpow2.f32 %v52_v6  ;;  %p171_p5 = por %p170_p4, %p169_p3 }
  0x2e   :  { %114 = vpow2.f32 %v54_v7 }
  0x2f   :  { %p172_p6 = pnand %p171_p5, %p165_p2 }
  0x37   :  { %v113_v8 = vpop.eup %112 }
  0x38   :  { %v115_v9 = vpop.eup %114  ;;  %v56_v10 = vadd.f32 1.0, %v113_v8  ;;  %v59_v12 = vmul.f32 -0.5, %v113_v8  ;;  %v62_v18 = vand.u32 2147483647, %v113_v8 }
  0x39   :  { %v65_v11 = vadd.f32 1.0, %v115_v9  ;;  %v68_v13 = vmul.f32 -0.5, %v115_v9  ;;  %v71_v21 = vand.u32 2147483647, %v115_v9 }
  0x3a   :  { %116 = vlog2.f32 %v56_v10  ;;  %v60_v15 = vadd.f32 1.0, %v59_v12  ;;  %vm63_vm0 = vcmp.lt.f32.partialorder %v62_v18, 0.0004427343 }
  0x3b   :  { %118 = vlog2.f32 %v65_v11  ;;  %v69_v19 = vadd.f32 1.0, %v68_v13  ;;  %vm72_vm1 = vcmp.lt.f32.partialorder %v71_v21, 0.0004427343 }
  0x3c   :  { %v61_v23 = vmul.f32 %v113_v8, %v60_v15 }
  0x3d   :  { %v70_v27 = vmul.f32 %v115_v9, %v69_v19 }
  0x44   :  { %v117_v25 = vpop.eup %116 }
  0x45   :  { %v119_v29 = vpop.eup %118  ;;  %v58_v31 = vmul.f32 0.6931472, %v117_v25 }
  0x46   :  { %v67_v33 = vmul.f32 0.6931472, %v119_v29 }
  0x47   :  { %v64_v35 = vsel %vm63_vm0, %v61_v23, %v58_v31 }
  0x48   :  { %v73_v37 = vsel %vm72_vm1, %v70_v27, %v67_v33  ;;  %v74_v38 = vadd.f32 %v64_v35, %v46_v26 }
  0x49   :  { %v75_v40 = vadd.f32 %v73_v37, %v47_v30 }
  0x4a   :  { %v84_v42 = vmul.f32 %v82_v34, %v74_v38 }
  0x4b   :  { %v85_v43 = vmul.f32 %v83_v36, %v75_v40 }
  0x4c   :  { %v86_v44 = vadd.f32 %v84_v42, %v78_v39 }
  0x4d   :  { %v87_v45 = vadd.f32 %v85_v43, %v79_v41 }
  0x4f   :  { %v88_v46 = vadd.f32 %v87_v45, %v86_v44 }
  0x51   :  { %90 = vst [vmem:[#allocation7] sm:$0xff] %v88_v46 }
  0x52   :  { %175 = shalt.err (!%p172_p6)
}
  0x53   :  { %s176_s10 = scalar_lea.hbm %s250_s2, 128 }
  0x54   :  { %p177_p7 = scmp.ne.s32.totalorder %s250_s2, %s176_s10  ;;  %p180_p8 = scmp.lt.u32.totalorder %s176_s10, %s250_s2 }
  0x56   :  { %p182_p9 = pnand %p180_p8, %p177_p7 }
  0x58   :  { %185 = shalt.err (!%p182_p9)
}
  0x59   :  { %100 = dma.vmem_to_hbm [thread:$0]  %s98_s6, 128, %s250_s2, [#allocation4]  }
  0x5a   :  { %190 = dma.done.wait [#allocation4], 128  }
  0x5b   :  { %191 = vsyncadd [#allocation4], 4294967168 }
  0x5c   :  { %104 = vsyncpa [#allocation3], 1 }
  0x5d   :  { %105 = vsyncpa [#allocation6], 1 }
  0x5e   :  { %106 = vsyncpa [#allocation4], 1 }

</bundles_post_ra>
